<compile_context>
chip_gen: v6e
topology: v6e:2x2x1
jax: 0.10.0
libtpu: 0.0.40
codegen_flags: <defaults>
</compile_context>

<pallas_src>
import functools

import jax
import jax.numpy as jnp
from jax.experimental import pallas as pl
from jax.experimental.pallas import tpu as pltpu

_LANE = 128


def _round_up(x, m):
    return ((x + m - 1) // m) * m


def _multicritic_kernel(x_ref,
                        w1_ref, b1_ref,
                        w2_ref, b2_ref,
                        w3_ref, b3_ref,
                        w4_ref, b4_ref,
                        out_ref, *, n_nets, hp, qp):
    x = x_ref[...]                                               # (tb, D_in) f32

    # Layer 1, fused across the ensemble: one wide MXU matmul instead of
    # n_nets narrow ones.  Per-net chunks live at 128-lane-aligned offsets.
    h_all = jnp.dot(x, w1_ref[...], preferred_element_type=jnp.float32) + b1_ref[...]
    h_all = jnp.maximum(h_all, 0.0)                              # (tb, n_nets*Hp)

    # Layers 2-4 per net; static Python loop -> fully unrolled, all matmuls in
    # one scheduling region.  All slices / stores are 128-lane aligned.
    for n in range(n_nets):
        h = h_all[:, n * hp:(n + 1) * hp]                        # (tb, Hp) aligned view
        h = jnp.maximum(
            jnp.dot(h, w2_ref[n], preferred_element_type=jnp.float32) + b2_ref[n],
            0.0)
        h = jnp.maximum(
            jnp.dot(h, w3_ref[n], preferred_element_type=jnp.float32) + b3_ref[n],
            0.0)
        q = jnp.dot(h, w4_ref[n], preferred_element_type=jnp.float32) + b4_ref[n]
        # Direct, unmasked, lane-aligned store of this net's quantile slab.
        out_ref[:, n * qp:(n + 1) * qp] = q.astype(out_ref.dtype)


def multicritic_forward(state, action, params, *, batch_tile=128):
    """Pallas equivalent of MultiCritic.forward(state, action).

    state:  (B, n_states)
    action: (B, n_actions)
    params: dict of stacked per-net weights:
            w1: (n_nets, D_in, H), b1: (n_nets, 1, H), ..., w4: (n_nets, H, Q),
            b4: (n_nets, 1, Q)
    returns quantiles: (B, n_nets, n_quantiles) float32
    """
    x = jnp.concatenate([state, action], axis=1).astype(jnp.float32)   # (B, D_in)
    B, D_in = x.shape
    n_nets, _, H = params["w1"].shape
    Q = params["w4"].shape[-1]

    Hp = _round_up(H, _LANE)
    Qp = _round_up(Q, _LANE)

    def pad_axis(a, axis, target):
        pad = target - a.shape[axis]
        if pad == 0:
            return a
        cfg = [(0, 0)] * a.ndim
        cfg[axis] = (0, pad)
        return jnp.pad(a, cfg)

    # Layer-1 weights fused across nets, lane-aligned per-net chunks of width Hp:
    # (n_nets, D_in, H) -> pad -> (n_nets, D_in, Hp) -> (D_in, n_nets*Hp).
    w1p = pad_axis(params["w1"], 2, Hp)
    w1_all = jnp.transpose(w1p, (1, 0, 2)).reshape(D_in, n_nets * Hp)
    b1_all = pad_axis(params["b1"], 2, Hp).reshape(1, n_nets * Hp)

    # Per-net weights, zero-padded to lane-aligned widths (numerically exact).
    w2 = pad_axis(pad_axis(params["w2"], 1, Hp), 2, Hp)      # (n, Hp, Hp)
    b2 = pad_axis(params["b2"], 2, Hp)                       # (n, 1, Hp)
    w3 = pad_axis(pad_axis(params["w3"], 1, Hp), 2, Hp)
    b3 = pad_axis(params["b3"], 2, Hp)
    w4 = pad_axis(pad_axis(params["w4"], 1, Hp), 2, Qp)      # (n, Hp, Qp)
    b4 = pad_axis(params["b4"], 2, Qp)                       # (n, 1, Qp)

    # Batch tiling: one grid step for small batches, else batch_tile-row tiles.
    if B <= batch_tile:
        tb, Bp = B, B
    else:
        tb = batch_tile
        Bp = pl.cdiv(B, tb) * tb
        if Bp != B:
            x = jnp.pad(x, ((0, Bp - B), (0, 0)))
    nb = Bp // tb

    # Weights: full-array blocks whose index_map ignores the batch index, so
    # they are fetched once and stay VMEM-resident across batch tiles.
    def fixed(shape):
        return pl.BlockSpec(shape, lambda i: (0,) * len(shape))

    out = pl.pallas_call(
        functools.partial(_multicritic_kernel, n_nets=n_nets, hp=Hp, qp=Qp),
        out_shape=jax.ShapeDtypeStruct((Bp, n_nets * Qp), jnp.float32),
        grid_spec=pltpu.PrefetchScalarGridSpec(
            num_scalar_prefetch=0,
            grid=(nb,),
            in_specs=[
                pl.BlockSpec((tb, D_in), lambda i: (i, 0)),      # x (batch-tiled)
                fixed(w1_all.shape), fixed(b1_all.shape),
                fixed(w2.shape), fixed(b2.shape),
                fixed(w3.shape), fixed(b3.shape),
                fixed(w4.shape), fixed(b4.shape),
            ],
            out_specs=pl.BlockSpec((tb, n_nets * Qp), lambda i: (i, 0)),
        ),
        compiler_params=pltpu.CompilerParams(
            dimension_semantics=("parallel",),
            vmem_limit_bytes=48 * 1024 * 1024,
        ),
    )(x,
      w1_all, b1_all,
      w2, b2,
      w3, b3,
      w4, b4)

    # (Bp, n_nets*Qp) -> (B, n_nets, Q), matching torch.stack(..., dim=1).
    return out.reshape(Bp, n_nets, Qp)[:B, :, :Q]


def init_params(key, n_states, n_actions, hidden, n_quantiles, n_nets):
    """Deterministic synthetic init (uniform fan-in style, like nn.Linear default)."""
    D_in = n_states + n_actions
    dims = [(D_in, hidden), (hidden, hidden), (hidden, hidden), (hidden, n_quantiles)]
    params = {}
    keys = jax.random.split(key, 2 * len(dims))
    for li, (fan_in, fan_out) in enumerate(dims, start=1):
        bound = 1.0 / jnp.sqrt(float(fan_in))
        wk, bk = keys[2 * (li - 1)], keys[2 * (li - 1) + 1]
        params[f"w{li}"] = jax.random.uniform(
            wk, (n_nets, fan_in, fan_out), jnp.float32, -bound, bound)
        params[f"b{li}"] = jax.random.uniform(
            bk, (n_nets, 1, fan_out), jnp.float32, -bound, bound)
    return params


def _reference_forward(state, action, params):
    """Pure-JAX reference for correctness checking."""
    x = jnp.concatenate([state, action], axis=1).astype(jnp.float32)
    outs = []
    n_nets = params["w1"].shape[0]
    for i in range(n_nets):
        h = jnp.maximum(x @ params["w1"][i] + params["b1"][i], 0.0)
        h = jnp.maximum(h @ params["w2"][i] + params["b2"][i], 0.0)
        h = jnp.maximum(h @ params["w3"][i] + params["b3"][i], 0.0)
        outs.append(h @ params["w4"][i] + params["b4"][i])
    return jnp.stack(outs, axis=1)


if __name__ == "__main__":
    # Small, module-consistent shapes.
    n_states, n_actions = 24, 8          # D_in = 32
    hidden = 32                          # args.cri_hidden_size
    n_quantiles = 25                     # args.n_quantiles
    n_nets = 3                           # args.n_nets
    batch = 2

    key = jax.random.PRNGKey(0)
    k_s, k_a, k_p, k_s2, k_a2 = jax.random.split(key, 5)
    state = jax.random.normal(k_s, (batch, n_states), jnp.float32)
    action = jax.random.normal(k_a, (batch, n_actions), jnp.float32)
    params = init_params(k_p, n_states, n_actions, hidden, n_quantiles, n_nets)

    quantiles = jax.block_until_ready(multicritic_forward(state, action, params))
    ref = _reference_forward(state, action, params)
    assert quantiles.shape == (batch, n_nets, n_quantiles), quantiles.shape
    assert jnp.allclose(quantiles, ref, atol=1e-4, rtol=1e-4), "mismatch vs reference"

    # Larger, non-tile-multiple batch exercises the batch-tiling / padding path.
    big_b = 200
    state2 = jax.random.normal(k_s2, (big_b, n_states), jnp.float32)
    action2 = jax.random.normal(k_a2, (big_b, n_actions), jnp.float32)
    q2 = jax.block_until_ready(multicritic_forward(state2, action2, params))
    ref2 = _reference_forward(state2, action2, params)
    assert q2.shape == (big_b, n_nets, n_quantiles), q2.shape
    assert jnp.allclose(q2, ref2, atol=1e-4, rtol=1e-4), "mismatch vs reference (tiled)"

    print("KERNEL_OK")
</pallas_src>

<mosaic_0001>
module attributes {stable_mosaic.version = 11 : i64} {
  func.func @_multicritic_kernel(%arg0: i32, %arg1: memref<2x32xf32, #tpu.memory_space<vmem>>, %arg2: memref<32x384xf32, #tpu.memory_space<vmem>>, %arg3: memref<1x384xf32, #tpu.memory_space<vmem>>, %arg4: memref<3x128x128xf32, #tpu.memory_space<vmem>>, %arg5: memref<3x1x128xf32, #tpu.memory_space<vmem>>, %arg6: memref<3x128x128xf32, #tpu.memory_space<vmem>>, %arg7: memref<3x1x128xf32, #tpu.memory_space<vmem>>, %arg8: memref<3x128x128xf32, #tpu.memory_space<vmem>>, %arg9: memref<3x1x128xf32, #tpu.memory_space<vmem>>, %arg10: memref<2x384xf32, #tpu.memory_space<vmem>>) attributes {dimension_semantics = [#tpu.dimension_semantics<parallel>], iteration_bounds = array<i64: 1>, scalar_prefetch = 0 : i64, scratch_operands = 0 : i64, tpu.core_type = #tpu.core_type<tc>, window_params = [{transform_indices = @transform_0, window_bounds = array<i64: 2, 32>}, {pipeline_mode = #tpu.pipeline_mode<synchronous>, transform_indices = @transform_1, window_bounds = array<i64: 32, 384>}, {pipeline_mode = #tpu.pipeline_mode<synchronous>, transform_indices = @transform_2, window_bounds = array<i64: 1, 384>}, {pipeline_mode = #tpu.pipeline_mode<synchronous>, transform_indices = @transform_3, window_bounds = array<i64: 3, 128, 128>}, {pipeline_mode = #tpu.pipeline_mode<synchronous>, transform_indices = @transform_4, window_bounds = array<i64: 3, 1, 128>}, {pipeline_mode = #tpu.pipeline_mode<synchronous>, transform_indices = @transform_5, window_bounds = array<i64: 3, 128, 128>}, {pipeline_mode = #tpu.pipeline_mode<synchronous>, transform_indices = @transform_6, window_bounds = array<i64: 3, 1, 128>}, {pipeline_mode = #tpu.pipeline_mode<synchronous>, transform_indices = @transform_7, window_bounds = array<i64: 3, 128, 128>}, {pipeline_mode = #tpu.pipeline_mode<synchronous>, transform_indices = @transform_8, window_bounds = array<i64: 3, 1, 128>}, {transform_indices = @transform_9, window_bounds = array<i64: 2, 384>}]} {
    %c0 = arith.constant 0 : index
    %c0_0 = arith.constant 0 : index
    %0 = vector.load %arg1[%c0, %c0_0] : memref<2x32xf32, #tpu.memory_space<vmem>>, vector<2x32xf32>
    %c0_1 = arith.constant 0 : index
    %c0_2 = arith.constant 0 : index
    %1 = vector.load %arg2[%c0_1, %c0_2] : memref<32x384xf32, #tpu.memory_space<vmem>>, vector<32x384xf32>
    %cst = arith.constant dense<0.000000e+00> : vector<2x384xf32>
    %2 = tpu.matmul %0, %1, %cst {dimension_numbers = #tpu.dot_dimension_numbers<[1], [0], [0], [1], [0, 0, 1, 1], [], []>} : vector<2x32xf32>, vector<32x384xf32>, vector<2x384xf32> -> vector<2x384xf32>
    %c0_3 = arith.constant 0 : index
    %c0_4 = arith.constant 0 : index
    %3 = vector.load %arg3[%c0_3, %c0_4] : memref<1x384xf32, #tpu.memory_space<vmem>>, vector<1x384xf32>
    %4 = vector.broadcast %3 : vector<1x384xf32> to vector<2x384xf32>
    %5 = arith.addf %2, %4 : vector<2x384xf32>
    %cst_5 = arith.constant 0.000000e+00 : f32
    %6 = vector.broadcast %cst_5 : f32 to vector<2x384xf32>
    %7 = arith.maximumf %5, %6 : vector<2x384xf32>
    %8 = vector.extract_strided_slice %7 {offsets = [0, 0], sizes = [2, 128], strides = [1, 1]} : vector<2x384xf32> to vector<2x128xf32>
    %c0_6 = arith.constant 0 : index
    %c0_7 = arith.constant 0 : index
    %c0_8 = arith.constant 0 : index
    %9 = vector.load %arg4[%c0_6, %c0_7, %c0_8] : memref<3x128x128xf32, #tpu.memory_space<vmem>>, vector<1x128x128xf32>
    %10 = vector.shape_cast %9 : vector<1x128x128xf32> to vector<128x128xf32>
    %cst_9 = arith.constant dense<0.000000e+00> : vector<2x128xf32>
    %11 = tpu.matmul %8, %10, %cst_9 {dimension_numbers = #tpu.dot_dimension_numbers<[1], [0], [0], [1], [0, 0, 1, 1], [], []>} : vector<2x128xf32>, vector<128x128xf32>, vector<2x128xf32> -> vector<2x128xf32>
    %c0_10 = arith.constant 0 : index
    %c0_11 = arith.constant 0 : index
    %c0_12 = arith.constant 0 : index
    %12 = vector.load %arg5[%c0_10, %c0_11, %c0_12] : memref<3x1x128xf32, #tpu.memory_space<vmem>>, vector<1x1x128xf32>
    %13 = vector.shape_cast %12 : vector<1x1x128xf32> to vector<1x128xf32>
    %14 = vector.broadcast %13 : vector<1x128xf32> to vector<2x128xf32>
    %15 = arith.addf %11, %14 : vector<2x128xf32>
    %cst_13 = arith.constant 0.000000e+00 : f32
    %16 = vector.broadcast %cst_13 : f32 to vector<2x128xf32>
    %17 = arith.maximumf %15, %16 : vector<2x128xf32>
    %c0_14 = arith.constant 0 : index
    %c0_15 = arith.constant 0 : index
    %c0_16 = arith.constant 0 : index
    %18 = vector.load %arg6[%c0_14, %c0_15, %c0_16] : memref<3x128x128xf32, #tpu.memory_space<vmem>>, vector<1x128x128xf32>
    %19 = vector.shape_cast %18 : vector<1x128x128xf32> to vector<128x128xf32>
    %cst_17 = arith.constant dense<0.000000e+00> : vector<2x128xf32>
    %20 = tpu.matmul %17, %19, %cst_17 {dimension_numbers = #tpu.dot_dimension_numbers<[1], [0], [0], [1], [0, 0, 1, 1], [], []>} : vector<2x128xf32>, vector<128x128xf32>, vector<2x128xf32> -> vector<2x128xf32>
    %c0_18 = arith.constant 0 : index
    %c0_19 = arith.constant 0 : index
    %c0_20 = arith.constant 0 : index
    %21 = vector.load %arg7[%c0_18, %c0_19, %c0_20] : memref<3x1x128xf32, #tpu.memory_space<vmem>>, vector<1x1x128xf32>
    %22 = vector.shape_cast %21 : vector<1x1x128xf32> to vector<1x128xf32>
    %23 = vector.broadcast %22 : vector<1x128xf32> to vector<2x128xf32>
    %24 = arith.addf %20, %23 : vector<2x128xf32>
    %cst_21 = arith.constant 0.000000e+00 : f32
    %25 = vector.broadcast %cst_21 : f32 to vector<2x128xf32>
    %26 = arith.maximumf %24, %25 : vector<2x128xf32>
    %c0_22 = arith.constant 0 : index
    %c0_23 = arith.constant 0 : index
    %c0_24 = arith.constant 0 : index
    %27 = vector.load %arg8[%c0_22, %c0_23, %c0_24] : memref<3x128x128xf32, #tpu.memory_space<vmem>>, vector<1x128x128xf32>
    %28 = vector.shape_cast %27 : vector<1x128x128xf32> to vector<128x128xf32>
    %cst_25 = arith.constant dense<0.000000e+00> : vector<2x128xf32>
    %29 = tpu.matmul %26, %28, %cst_25 {dimension_numbers = #tpu.dot_dimension_numbers<[1], [0], [0], [1], [0, 0, 1, 1], [], []>} : vector<2x128xf32>, vector<128x128xf32>, vector<2x128xf32> -> vector<2x128xf32>
    %c0_26 = arith.constant 0 : index
    %c0_27 = arith.constant 0 : index
    %c0_28 = arith.constant 0 : index
    %30 = vector.load %arg9[%c0_26, %c0_27, %c0_28] : memref<3x1x128xf32, #tpu.memory_space<vmem>>, vector<1x1x128xf32>
    %31 = vector.shape_cast %30 : vector<1x1x128xf32> to vector<1x128xf32>
    %32 = vector.broadcast %31 : vector<1x128xf32> to vector<2x128xf32>
    %33 = arith.addf %29, %32 : vector<2x128xf32>
    %c0_29 = arith.constant 0 : index
    %c0_30 = arith.constant 0 : index
    %34 = vector.load %arg10[%c0_29, %c0_30] : memref<2x384xf32, #tpu.memory_space<vmem>>, vector<2x128xf32>
    tpu.vector_store %arg10[%c0_29, %c0_30], %33 {strides = array<i32>} : memref<2x384xf32, #tpu.memory_space<vmem>>, vector<2x128xf32>,
    %35 = vector.extract_strided_slice %7 {offsets = [0, 128], sizes = [2, 128], strides = [1, 1]} : vector<2x384xf32> to vector<2x128xf32>
    %c1 = arith.constant 1 : index
    %c0_31 = arith.constant 0 : index
    %c0_32 = arith.constant 0 : index
    %36 = vector.load %arg4[%c1, %c0_31, %c0_32] : memref<3x128x128xf32, #tpu.memory_space<vmem>>, vector<1x128x128xf32>
    %37 = vector.shape_cast %36 : vector<1x128x128xf32> to vector<128x128xf32>
    %cst_33 = arith.constant dense<0.000000e+00> : vector<2x128xf32>
    %38 = tpu.matmul %35, %37, %cst_33 {dimension_numbers = #tpu.dot_dimension_numbers<[1], [0], [0], [1], [0, 0, 1, 1], [], []>} : vector<2x128xf32>, vector<128x128xf32>, vector<2x128xf32> -> vector<2x128xf32>
    %c1_34 = arith.constant 1 : index
    %c0_35 = arith.constant 0 : index
    %c0_36 = arith.constant 0 : index
    %39 = vector.load %arg5[%c1_34, %c0_35, %c0_36] : memref<3x1x128xf32, #tpu.memory_space<vmem>>, vector<1x1x128xf32>
    %40 = vector.shape_cast %39 : vector<1x1x128xf32> to vector<1x128xf32>
    %41 = vector.broadcast %40 : vector<1x128xf32> to vector<2x128xf32>
    %42 = arith.addf %38, %41 : vector<2x128xf32>
    %cst_37 = arith.constant 0.000000e+00 : f32
    %43 = vector.broadcast %cst_37 : f32 to vector<2x128xf32>
    %44 = arith.maximumf %42, %43 : vector<2x128xf32>
    %c1_38 = arith.constant 1 : index
    %c0_39 = arith.constant 0 : index
    %c0_40 = arith.constant 0 : index
    %45 = vector.load %arg6[%c1_38, %c0_39, %c0_40] : memref<3x128x128xf32, #tpu.memory_space<vmem>>, vector<1x128x128xf32>
    %46 = vector.shape_cast %45 : vector<1x128x128xf32> to vector<128x128xf32>
    %cst_41 = arith.constant dense<0.000000e+00> : vector<2x128xf32>
    %47 = tpu.matmul %44, %46, %cst_41 {dimension_numbers = #tpu.dot_dimension_numbers<[1], [0], [0], [1], [0, 0, 1, 1], [], []>} : vector<2x128xf32>, vector<128x128xf32>, vector<2x128xf32> -> vector<2x128xf32>
    %c1_42 = arith.constant 1 : index
    %c0_43 = arith.constant 0 : index
    %c0_44 = arith.constant 0 : index
    %48 = vector.load %arg7[%c1_42, %c0_43, %c0_44] : memref<3x1x128xf32, #tpu.memory_space<vmem>>, vector<1x1x128xf32>
    %49 = vector.shape_cast %48 : vector<1x1x128xf32> to vector<1x128xf32>
    %50 = vector.broadcast %49 : vector<1x128xf32> to vector<2x128xf32>
    %51 = arith.addf %47, %50 : vector<2x128xf32>
    %cst_45 = arith.constant 0.000000e+00 : f32
    %52 = vector.broadcast %cst_45 : f32 to vector<2x128xf32>
    %53 = arith.maximumf %51, %52 : vector<2x128xf32>
    %c1_46 = arith.constant 1 : index
    %c0_47 = arith.constant 0 : index
    %c0_48 = arith.constant 0 : index
    %54 = vector.load %arg8[%c1_46, %c0_47, %c0_48] : memref<3x128x128xf32, #tpu.memory_space<vmem>>, vector<1x128x128xf32>
    %55 = vector.shape_cast %54 : vector<1x128x128xf32> to vector<128x128xf32>
    %cst_49 = arith.constant dense<0.000000e+00> : vector<2x128xf32>
    %56 = tpu.matmul %53, %55, %cst_49 {dimension_numbers = #tpu.dot_dimension_numbers<[1], [0], [0], [1], [0, 0, 1, 1], [], []>} : vector<2x128xf32>, vector<128x128xf32>, vector<2x128xf32> -> vector<2x128xf32>
    %c1_50 = arith.constant 1 : index
    %c0_51 = arith.constant 0 : index
    %c0_52 = arith.constant 0 : index
    %57 = vector.load %arg9[%c1_50, %c0_51, %c0_52] : memref<3x1x128xf32, #tpu.memory_space<vmem>>, vector<1x1x128xf32>
    %58 = vector.shape_cast %57 : vector<1x1x128xf32> to vector<1x128xf32>
    %59 = vector.broadcast %58 : vector<1x128xf32> to vector<2x128xf32>
    %60 = arith.addf %56, %59 : vector<2x128xf32>
    %c0_53 = arith.constant 0 : index
    %c128 = arith.constant 128 : index
    %61 = vector.load %arg10[%c0_53, %c128] : memref<2x384xf32, #tpu.memory_space<vmem>>, vector<2x128xf32>
    tpu.vector_store %arg10[%c0_53, %c128], %60 {strides = array<i32>} : memref<2x384xf32, #tpu.memory_space<vmem>>, vector<2x128xf32>,
    %62 = vector.extract_strided_slice %7 {offsets = [0, 256], sizes = [2, 128], strides = [1, 1]} : vector<2x384xf32> to vector<2x128xf32>
    %c2 = arith.constant 2 : index
    %c0_54 = arith.constant 0 : index
    %c0_55 = arith.constant 0 : index
    %63 = vector.load %arg4[%c2, %c0_54, %c0_55] : memref<3x128x128xf32, #tpu.memory_space<vmem>>, vector<1x128x128xf32>
    %64 = vector.shape_cast %63 : vector<1x128x128xf32> to vector<128x128xf32>
    %cst_56 = arith.constant dense<0.000000e+00> : vector<2x128xf32>
    %65 = tpu.matmul %62, %64, %cst_56 {dimension_numbers = #tpu.dot_dimension_numbers<[1], [0], [0], [1], [0, 0, 1, 1], [], []>} : vector<2x128xf32>, vector<128x128xf32>, vector<2x128xf32> -> vector<2x128xf32>
    %c2_57 = arith.constant 2 : index
    %c0_58 = arith.constant 0 : index
    %c0_59 = arith.constant 0 : index
    %66 = vector.load %arg5[%c2_57, %c0_58, %c0_59] : memref<3x1x128xf32, #tpu.memory_space<vmem>>, vector<1x1x128xf32>
    %67 = vector.shape_cast %66 : vector<1x1x128xf32> to vector<1x128xf32>
    %68 = vector.broadcast %67 : vector<1x128xf32> to vector<2x128xf32>
    %69 = arith.addf %65, %68 : vector<2x128xf32>
    %cst_60 = arith.constant 0.000000e+00 : f32
    %70 = vector.broadcast %cst_60 : f32 to vector<2x128xf32>
    %71 = arith.maximumf %69, %70 : vector<2x128xf32>
    %c2_61 = arith.constant 2 : index
    %c0_62 = arith.constant 0 : index
    %c0_63 = arith.constant 0 : index
    %72 = vector.load %arg6[%c2_61, %c0_62, %c0_63] : memref<3x128x128xf32, #tpu.memory_space<vmem>>, vector<1x128x128xf32>
    %73 = vector.shape_cast %72 : vector<1x128x128xf32> to vector<128x128xf32>
    %cst_64 = arith.constant dense<0.000000e+00> : vector<2x128xf32>
    %74 = tpu.matmul %71, %73, %cst_64 {dimension_numbers = #tpu.dot_dimension_numbers<[1], [0], [0], [1], [0, 0, 1, 1], [], []>} : vector<2x128xf32>, vector<128x128xf32>, vector<2x128xf32> -> vector<2x128xf32>
    %c2_65 = arith.constant 2 : index
    %c0_66 = arith.constant 0 : index
    %c0_67 = arith.constant 0 : index
    %75 = vector.load %arg7[%c2_65, %c0_66, %c0_67] : memref<3x1x128xf32, #tpu.memory_space<vmem>>, vector<1x1x128xf32>
    %76 = vector.shape_cast %75 : vector<1x1x128xf32> to vector<1x128xf32>
    %77 = vector.broadcast %76 : vector<1x128xf32> to vector<2x128xf32>
    %78 = arith.addf %74, %77 : vector<2x128xf32>
    %cst_68 = arith.constant 0.000000e+00 : f32
    %79 = vector.broadcast %cst_68 : f32 to vector<2x128xf32>
    %80 = arith.maximumf %78, %79 : vector<2x128xf32>
    %c2_69 = arith.constant 2 : index
    %c0_70 = arith.constant 0 : index
    %c0_71 = arith.constant 0 : index
    %81 = vector.load %arg8[%c2_69, %c0_70, %c0_71] : memref<3x128x128xf32, #tpu.memory_space<vmem>>, vector<1x128x128xf32>
    %82 = vector.shape_cast %81 : vector<1x128x128xf32> to vector<128x128xf32>
    %cst_72 = arith.constant dense<0.000000e+00> : vector<2x128xf32>
    %83 = tpu.matmul %80, %82, %cst_72 {dimension_numbers = #tpu.dot_dimension_numbers<[1], [0], [0], [1], [0, 0, 1, 1], [], []>} : vector<2x128xf32>, vector<128x128xf32>, vector<2x128xf32> -> vector<2x128xf32>
    %c2_73 = arith.constant 2 : index
    %c0_74 = arith.constant 0 : index
    %c0_75 = arith.constant 0 : index
    %84 = vector.load %arg9[%c2_73, %c0_74, %c0_75] : memref<3x1x128xf32, #tpu.memory_space<vmem>>, vector<1x1x128xf32>
    %85 = vector.shape_cast %84 : vector<1x1x128xf32> to vector<1x128xf32>
    %86 = vector.broadcast %85 : vector<1x128xf32> to vector<2x128xf32>
    %87 = arith.addf %83, %86 : vector<2x128xf32>
    %c0_76 = arith.constant 0 : index
    %c256 = arith.constant 256 : index
    %88 = vector.load %arg10[%c0_76, %c256] : memref<2x384xf32, #tpu.memory_space<vmem>>, vector<2x128xf32>
    tpu.vector_store %arg10[%c0_76, %c256], %87 {strides = array<i32>} : memref<2x384xf32, #tpu.memory_space<vmem>>, vector<2x128xf32>,
    return
  }
  func.func @transform_0(%arg0: i32) -> (i32, i32) {
    %c0_i32 = arith.constant 0 : i32
    %c0_i32_0 = arith.constant 0 : i32
    return %arg0, %c0_i32 : i32, i32
  }
  func.func @transform_1(%arg0: i32) -> (i32, i32) {
    %c0_i32 = arith.constant 0 : i32
    %c0_i32_0 = arith.constant 0 : i32
    %c0_i32_1 = arith.constant 0 : i32
    return %c0_i32, %c0_i32_0 : i32, i32
  }
  func.func @transform_2(%arg0: i32) -> (i32, i32) {
    %c0_i32 = arith.constant 0 : i32
    %c0_i32_0 = arith.constant 0 : i32
    %c0_i32_1 = arith.constant 0 : i32
    return %c0_i32, %c0_i32_0 : i32, i32
  }
  func.func @transform_3(%arg0: i32) -> (i32, i32, i32) {
    %c0_i32 = arith.constant 0 : i32
    %c0_i32_0 = arith.constant 0 : i32
    %c0_i32_1 = arith.constant 0 : i32
    %c0_i32_2 = arith.constant 0 : i32
    return %c0_i32, %c0_i32_0, %c0_i32_1 : i32, i32, i32
  }
  func.func @transform_4(%arg0: i32) -> (i32, i32, i32) {
    %c0_i32 = arith.constant 0 : i32
    %c0_i32_0 = arith.constant 0 : i32
    %c0_i32_1 = arith.constant 0 : i32
    %c0_i32_2 = arith.constant 0 : i32
    return %c0_i32, %c0_i32_0, %c0_i32_1 : i32, i32, i32
  }
  func.func @transform_5(%arg0: i32) -> (i32, i32, i32) {
    %c0_i32 = arith.constant 0 : i32
    %c0_i32_0 = arith.constant 0 : i32
    %c0_i32_1 = arith.constant 0 : i32
    %c0_i32_2 = arith.constant 0 : i32
    return %c0_i32, %c0_i32_0, %c0_i32_1 : i32, i32, i32
  }
  func.func @transform_6(%arg0: i32) -> (i32, i32, i32) {
    %c0_i32 = arith.constant 0 : i32
    %c0_i32_0 = arith.constant 0 : i32
    %c0_i32_1 = arith.constant 0 : i32
    %c0_i32_2 = arith.constant 0 : i32
    return %c0_i32, %c0_i32_0, %c0_i32_1 : i32, i32, i32
  }
  func.func @transform_7(%arg0: i32) -> (i32, i32, i32) {
    %c0_i32 = arith.constant 0 : i32
    %c0_i32_0 = arith.constant 0 : i32
    %c0_i32_1 = arith.constant 0 : i32
    %c0_i32_2 = arith.constant 0 : i32
    return %c0_i32, %c0_i32_0, %c0_i32_1 : i32, i32, i32
  }
  func.func @transform_8(%arg0: i32) -> (i32, i32, i32) {
    %c0_i32 = arith.constant 0 : i32
    %c0_i32_0 = arith.constant 0 : i32
    %c0_i32_1 = arith.constant 0 : i32
    %c0_i32_2 = arith.constant 0 : i32
    return %c0_i32, %c0_i32_0, %c0_i32_1 : i32, i32, i32
  }
  func.func @transform_9(%arg0: i32) -> (i32, i32) {
    %c0_i32 = arith.constant 0 : i32
    %c0_i32_0 = arith.constant 0 : i32
    return %arg0, %c0_i32 : i32, i32
  }
}

</mosaic_0001>

<bundles_post_ra>
// kernel: tpu_custom_call.1
= control target key start
LH: loop header
LB: loop body
LE: loop exit
PB: predicated region body
PF: predicated region fallthrough
CT: control target
= control target key end

     0   :  { %14 = vsyncpa [#allocation3], 0  ;;  %s2103_s0 = inlined_call_operand.hbm [shape: f32[2,32], index: 0, kind: input, shape index: {}]   ;;  %s2104_s1 = inlined_call_operand.hbm [shape: f32[32,384], index: 1, kind: input, shape index: {}]   ;;  %s2105_s2 = inlined_call_operand.vmem [shape: f32[1,384], index: 2, kind: input, shape index: {}]   ;;  %s2106_s3 = inlined_call_operand.hbm [shape: f32[3,128,128], index: 3, kind: input, shape index: {}]   ;;  %s2107_s4 = inlined_call_operand.vmem [shape: f32[3,1,128], index: 4, kind: input, shape index: {}]   ;;  %s2108_s5 = inlined_call_operand.hbm [shape: f32[3,128,128], index: 5, kind: input, shape index: {}]   ;;  %s2109_s6 = inlined_call_operand.vmem [shape: f32[3,1,128], index: 6, kind: input, shape index: {}]   ;;  %s2110_s7 = inlined_call_operand.hbm [shape: f32[3,128,128], index: 7, kind: input, shape index: {}]   ;;  %s2111_s8 = inlined_call_operand.vmem [shape: f32[3,1,128], index: 8, kind: input, shape index: {}]   ;;  %s2112_s9 = inlined_call_operand.hbm [shape: f32[2,384], index: 9, kind: output, shape index: {}]  }
   0x1   :  { %15 = vsyncpa [#allocation6], 0 }
   0x2   :  { %16 = vsyncpa [#allocation9], 0 }
   0x3   :  { %17 = vsyncpa [#allocation4], 0  ;;  %s1793_s30 = smov [#allocation5]  }
   0x4   :  { %s33_s10 = sshll.u32 %s1793_s30, 4  ;;  %s34_s10 = int_to_ptr.vmem [resolvable:$true] %s33_s10 }
   0x5   :  { %s1673_s11 = scalar_lea.vmem %s34_s10, 1536  ;;  %p1678_p1 = scmp.lt.s32.totalorder %s34_s10, %s34_s10 }
   0x6   :  { %p1674_p0 = scmp.ne.s32.totalorder %s34_s10, %s1673_s11  ;;  %p1679_p2 = scmp.lt.s32.totalorder %s1673_s11, %s1673_s11 }
   0x8   :  { %p1680_p3 = por %p1679_p2, %p1678_p1 }
   0xa   :  { %p1681_p4 = pnand %p1680_p3, %p1674_p0 }
   0xc   :  { %1684 = shalt.err (!%p1681_p4)
}
   0xd   :  { %s1794_s12 = smov 384   ;;  %s1795_s13 = smov 24  }
   0xe   :  { %39 = dma.hbm_to_vmem [thread:$0]  %s2104_s1, 1536, %s34_s10, [#allocation6], %s1794_s12, %s1794_s12, %s1795_s13  }
   0xf   :  { %s1796_s16 = smov [#allocation8]   ;;  %s1797_s18 = smov [#allocation2]  }
  0x10   :  { %s61_s17 = sshll.u32 %s1796_s16, 4  ;;  %s24_s19 = sshll.u32 %s1797_s18, 4  ;;  %s62_s17 = int_to_ptr.vmem [resolvable:$true] %s61_s17  ;;  %s25_s19 = int_to_ptr.vmem [resolvable:$true] %s24_s19 }
  0x11   :  { %s1693_s20 = scalar_lea.vmem %s62_s17, 6144  ;;  %p1698_p6 = scmp.lt.s32.totalorder %s62_s17, %s62_s17 }
  0x12   :  { %p1694_p5 = scmp.ne.s32.totalorder %s62_s17, %s1693_s20  ;;  %p1699_p7 = scmp.lt.s32.totalorder %s1693_s20, %s1693_s20 }
  0x14   :  { %p1700_p8 = por %p1699_p7, %p1698_p6 }
  0x16   :  { %p1701_p9 = pnand %p1700_p8, %p1694_p5 }
  0x18   :  { %1704 = shalt.err (!%p1701_p9)
}
  0x19   :  { %s1798_s21 = smov 128   ;;  %s1799_s22 = smov 8  }
  0x1a   :  { %67 = dma.hbm_to_vmem [thread:$0]  %s2108_s5, 6144, %s62_s17, [#allocation9], %s1798_s21, %s1798_s21, %s1799_s22  }
  0x1b   :  { %s1713_s1 = scalar_lea.vmem %s25_s19, 32  ;;  %p1718_p11 = scmp.lt.s32.totalorder %s25_s19, %s25_s19 }
  0x1c   :  { %p1714_p10 = scmp.ne.s32.totalorder %s25_s19, %s1713_s1  ;;  %p1719_p12 = scmp.lt.s32.totalorder %s1713_s1, %s1713_s1 }
  0x1e   :  { %p1720_p13 = por %p1719_p12, %p1718_p11 }
  0x20   :  { %p1721_p0 = pnand %p1720_p13, %p1714_p10 }
  0x22   :  { %1724 = shalt.err (!%p1721_p0)
}
  0x23   :  { %27 = dma.hbm_to_vmem [thread:$0]  %s2103_s0, 32, %s25_s19, [#allocation3]  }
  0x24   :  { %s1800_s27 = smov [#allocation7]   ;;  %s1801_s29 = smov [#allocation10]  }
  0x25   :  { %s47_s28 = sshll.u32 %s1800_s27, 4  ;;  %s75_s30 = sshll.u32 %s1801_s29, 4  ;;  %s48_s28 = int_to_ptr.vmem [resolvable:$true] %s47_s28  ;;  %s76_s30 = int_to_ptr.vmem [resolvable:$true] %s75_s30 }
  0x26   :  { %s1733_s10 = scalar_lea.vmem %s48_s28, 6144  ;;  %p1738_p2 = scmp.lt.s32.totalorder %s48_s28, %s48_s28 }
  0x27   :  { %p1734_p1 = scmp.ne.s32.totalorder %s48_s28, %s1733_s10  ;;  %p1739_p3 = scmp.lt.s32.totalorder %s1733_s10, %s1733_s10 }
  0x29   :  { %p1740_p4 = por %p1739_p3, %p1738_p2 }
  0x2b   :  { %p1741_p5 = pnand %p1740_p4, %p1734_p1 }
  0x2d   :  { %1744 = shalt.err (!%p1741_p5)
}
  0x2e   :  { %53 = dma.hbm_to_vmem [thread:$0]  %s2106_s3, 6144, %s48_s28, [#allocation6], %s1798_s21, %s1798_s21, %s1799_s22  }
  0x2f   :  { %s1753_s0 = scalar_lea.vmem %s76_s30, 6144  ;;  %p1758_p7 = scmp.lt.s32.totalorder %s76_s30, %s76_s30 }
  0x30   :  { %p1754_p6 = scmp.ne.s32.totalorder %s76_s30, %s1753_s0  ;;  %p1759_p8 = scmp.lt.s32.totalorder %s1753_s0, %s1753_s0 }
  0x32   :  { %p1760_p9 = por %p1759_p8, %p1758_p7 }
  0x34   :  { %p1761_p10 = pnand %p1760_p9, %p1754_p6 }
  0x36   :  { %1764 = shalt.err (!%p1761_p10)
}
  0x37   :  { %81 = dma.hbm_to_vmem [thread:$0]  %s2110_s7, 6144, %s76_s30, [#allocation9], %s1798_s21, %s1798_s21, %s1799_s22  }
  0x38   :  { %1785 = dma.done.wait [#allocation3], 32  }
  0x39   :  { %1786 = vsyncadd [#allocation3], 4294967264 }
  0x3a   :  { %1787 = dma.done.wait [#allocation6], 7680  }
  0x3b   :  { %1788 = vsyncadd [#allocation6], 4294959616 }
  0x3c   :  { %1789 = dma.done.wait [#allocation9], 12288  }
  0x3d   :  { %1790 = vsyncadd [#allocation9], 4294955008  ;;  %v1802_v0 = vmov 0.0   ;;  %v110_v1 = vld [vmem:[#allocation5 + $0x50] sm:$0xff]  ;;  %v109_v2 = vld [vmem:[#allocation5 + $0x48] sm:$0xff]  ;;  %vm129_vm0 = vcmask 261120   ;;  %v114_v44 = vlaneseq }
  0x3e   :  { %197 = vmatprep.mubr.f32.mxu1 %v1802_v0  ;;  %1338 = vmatprep.subr.mxu0 %v1802_v0  ;;  %v107_v3 = vld [vmem:[#allocation5 + $0x38] sm:$0xff]  ;;  %v106_v4 = vld [vmem:[#allocation5 + $0x30] sm:$0xff]  ;;  %v104_v5 = vld [vmem:[#allocation5 + $0x20] sm:$0xff]  ;;  %vm1803_vm1 = vmmov 0   ;;  %s1804_s29 = smov [#allocation11]  }
  0x3f   :  { %157 = vmatprep.subr.mxu1 %v110_v1  ;;  %v103_v6 = vld [vmem:[#allocation5 + $0x18] sm:$0xff]  ;;  %v291_v8 = vld [vmem:[#allocation7 + $0x70] sm:$0xff]  ;;  %v101_v9 = vld [vmem:[#allocation5 + $0x8] sm:$0xff]  ;;  %1370 = vmatprep.mubr.msk.f32.mxu0 %vm1803_vm1, %v1802_v0  ;;  %v1928_v45 = vshrl.u32 %v114_v44, 7  ;;  %s1141_s30 = sshll.u32 %s1804_s29, 4  ;;  %s1142_s30 = int_to_ptr.vmem [resolvable:$true] %s1141_s30 }
  0x40   :  { %158 = vmatpush1.msra.mxu1 %v109_v2  ;;  %v292_v7 = vld [vmem:[#allocation7 + $0x78] sm:$0xff]  ;;  %v100_v10 = vld [vmem:[#allocation5] sm:$0xff]  ;;  %v290_v11 = vld [vmem:[#allocation7 + $0x68] sm:$0xff]  ;;  %s1765_s10 = scalar_lea.vmem %s1142_s30, 96  ;;  %p1770_p12 = scmp.lt.s32.totalorder %s1142_s30, %s1142_s30 }
  0x41   :  { %159 = vmatprep.subr.mxu1 %v107_v3  ;;  %1339 = vmatpush3.msra.mxu0 %v292_v7  ;;  %v1882_v12 = vld [vmem:[#allocation2] sm:$0x3]  ;;  %v289_v13 = vld [vmem:[#allocation7 + $0x60] sm:$0xff]  ;;  %v287_v15 = vld [vmem:[#allocation7 + $0x50] sm:$0xff]  ;;  %v116_v46 = vsub.s32 0, %v1928_v45  ;;  %p1766_p11 = scmp.ne.s32.totalorder %s1142_s30, %s1765_s10  ;;  %p1771_p13 = scmp.lt.s32.totalorder %s1765_s10, %s1765_s10 }
  0x42   :  { %160 = vmatpush1.msra.mxu1 %v106_v4  ;;  %1340 = vmatprep.subr.mxu0 %v1802_v0  ;;  %v288_v14 = vld [vmem:[#allocation7 + $0x58] sm:$0xff]  ;;  %v286_v16 = vld [vmem:[#allocation7 + $0x48] sm:$0xff]  ;;  %v285_v17 = vld [vmem:[#allocation7 + $0x40] sm:$0xff] }
  0x43   :  { %161 = vmatprep.subr.mxu1 %v104_v5  ;;  %1341 = vmatpush3.msra.mxu0 %v291_v8  ;;  %v284_v18 = vld [vmem:[#allocation7 + $0x38] sm:$0xff]  ;;  %v283_v19 = vld [vmem:[#allocation7 + $0x30] sm:$0xff]  ;;  %v282_v20 = vld [vmem:[#allocation7 + $0x28] sm:$0xff]  ;;  %p1772_p0 = por %p1771_p13, %p1770_p12 }
  0x44   :  { %162 = vmatpush1.msra.mxu1 %v103_v6  ;;  %1342 = vmatprep.subr.mxu0 %v1802_v0  ;;  %v281_v21 = vld [vmem:[#allocation7 + $0x20] sm:$0xff]  ;;  %v280_v22 = vld [vmem:[#allocation7 + $0x18] sm:$0xff]  ;;  %v279_v23 = vld [vmem:[#allocation7 + $0x10] sm:$0xff] }
  0x45   :  { %163 = vmatprep.subr.mxu1 %v101_v9  ;;  %1343 = vmatpush3.msra.mxu0 %v290_v11  ;;  %v278_v24 = vld [vmem:[#allocation7 + $0x8] sm:$0xff]  ;;  %v277_v25 = vld [vmem:[#allocation7] sm:$0xff]  ;;  %v111_v26 = vld [vmem:[#allocation5 + $0x58] sm:$0xff]  ;;  %p1773_p1 = pnand %p1772_p0, %p1766_p11 }
  0x46   :  { %164 = vmatpush1.msra.mxu1 %v100_v10  ;;  %1344 = vmatprep.subr.mxu0 %v1802_v0  ;;  %v108_v27 = vld [vmem:[#allocation5 + $0x40] sm:$0xff]  ;;  %v105_v28 = vld [vmem:[#allocation5 + $0x28] sm:$0xff]  ;;  %v102_v29 = vld [vmem:[#allocation5 + $0x10] sm:$0xff] }
  0x47   :  { %1152 = vmatmul.mubr.msk.f32.vlgmr.msra.gmra.mxu1 %vm129_vm0, %v1882_v12  ;;  %1345 = vmatpush3.msra.mxu0 %v289_v13  ;;  %v386_v30 = vld [vmem:[#allocation8 + $0x78] sm:$0xff]  ;;  %v385_v31 = vld [vmem:[#allocation8 + $0x70] sm:$0xff]  ;;  %v384_v32 = vld [vmem:[#allocation8 + $0x68] sm:$0xff] }
  0x48   :  { %1327 = vmatprep.subr.mxu1 %v1802_v0  ;;  %1346 = vmatprep.subr.mxu0 %v1802_v0  ;;  %v383_v33 = vld [vmem:[#allocation8 + $0x60] sm:$0xff]  ;;  %v382_v34 = vld [vmem:[#allocation8 + $0x58] sm:$0xff]  ;;  %v381_v35 = vld [vmem:[#allocation8 + $0x50] sm:$0xff] }
  0x49   :  { %1347 = vmatpush3.msra.mxu0 %v288_v14  ;;  %1335 = vmatprep.mubr.msk.f32.mxu1 %vm1803_vm1, %v1802_v0  ;;  %v380_v36 = vld [vmem:[#allocation8 + $0x48] sm:$0xff]  ;;  %v379_v37 = vld [vmem:[#allocation8 + $0x40] sm:$0xff]  ;;  %v378_v38 = vld [vmem:[#allocation8 + $0x38] sm:$0xff] }
  0x4a   :  { %1348 = vmatprep.subr.mxu0 %v1802_v0  ;;  %1328 = vmatpush3.msra.mxu1 %v111_v26  ;;  %v377_v39 = vld [vmem:[#allocation8 + $0x30] sm:$0xff]  ;;  %v376_v40 = vld [vmem:[#allocation8 + $0x28] sm:$0xff]  ;;  %v375_v41 = vld [vmem:[#allocation8 + $0x20] sm:$0xff] }
  0x4b   :  { %1349 = vmatpush3.msra.mxu0 %v287_v15  ;;  %1329 = vmatprep.subr.mxu1 %v1802_v0  ;;  %v374_v42 = vld [vmem:[#allocation8 + $0x18] sm:$0xff]  ;;  %v373_v43 = vld [vmem:[#allocation8 + $0x10] sm:$0xff]  ;;  %v372_v52 = vld [vmem:[#allocation8 + $0x8] sm:$0xff] }
  0x4c   :  { %1350 = vmatprep.subr.mxu0 %v1802_v0  ;;  %1330 = vmatpush3.msra.mxu1 %v108_v27  ;;  %v1934_v47 = vld [vmem:[%s2105_s2] sm:$0x7]  ;;  %v371_v53 = vld [vmem:[#allocation8] sm:$0xff]  ;;  %v480_v56 = vld [vmem:[#allocation10 + $0x78] sm:$0xff] }
  0x4d   :  { %1351 = vmatpush3.msra.mxu0 %v286_v16  ;;  %1331 = vmatprep.subr.mxu1 %v1802_v0  ;;  %v117_v48 = vrot.slane %v1934_v47, %v116_v46  ;;  %v479_v57 = vld [vmem:[#allocation10 + $0x70] sm:$0xff]  ;;  %v478_v59 = vld [vmem:[#allocation10 + $0x68] sm:$0xff]  ;;  %v477_v60 = vld [vmem:[#allocation10 + $0x60] sm:$0xff] }
  0x4e   :  { %1352 = vmatprep.subr.mxu0 %v1802_v0  ;;  %1332 = vmatpush3.msra.mxu1 %v105_v28  ;;  %v476_v61 = vld [vmem:[#allocation10 + $0x58] sm:$0xff]  ;;  %v475_v62 = vld [vmem:[#allocation10 + $0x50] sm:$0xff]  ;;  %v474_v63 = vld [vmem:[#allocation10 + $0x48] sm:$0xff] }
  0x4f   :  { %1353 = vmatpush3.msra.mxu0 %v285_v17  ;;  %1333 = vmatprep.subr.mxu1 %v1802_v0  ;;  %v473_v1 = vld [vmem:[#allocation10 + $0x40] sm:$0xff]  ;;  %v472_v2 = vld [vmem:[#allocation10 + $0x38] sm:$0xff]  ;;  %v471_v3 = vld [vmem:[#allocation10 + $0x30] sm:$0xff] }
  0x50   :  { %1354 = vmatprep.subr.mxu0 %v1802_v0  ;;  %1334 = vmatpush3.msra.mxu1 %v102_v29  ;;  %v470_v4 = vld [vmem:[#allocation10 + $0x28] sm:$0xff]  ;;  %v469_v5 = vld [vmem:[#allocation10 + $0x20] sm:$0xff]  ;;  %v468_v6 = vld [vmem:[#allocation10 + $0x18] sm:$0xff] }
  0x51   :  { %1355 = vmatpush3.msra.mxu0 %v284_v18  ;;  %1336 = vmatmul.mubr.msk.f32.vlgmr.msra.gmra.mxu1 %vm129_vm0, %v1882_v12  ;;  %v467_v7 = vld [vmem:[#allocation10 + $0x10] sm:$0xff]  ;;  %v1154_v8 = vld [vmem:[%s2107_s4] ss:$0 sm:$0xff]  ;;  %v575_v13 = vld [vmem:[#allocation7 + $0xf8] sm:$0xff] }
  0x52   :  { %1356 = vmatprep.subr.mxu0 %v1802_v0  ;;  %1373 = vmatprep.subr.mxu1 %v1802_v0  ;;  %v574_v14 = vld [vmem:[#allocation7 + $0xf0] sm:$0xff]  ;;  %v573_v15 = vld [vmem:[#allocation7 + $0xe8] sm:$0xff]  ;;  %v572_v16 = vld [vmem:[#allocation7 + $0xe0] sm:$0xff] }
  0x53   :  { %1357 = vmatpush3.msra.mxu0 %v283_v19  ;;  %1374 = vmatpush3.msra.mxu1 %v386_v30  ;;  %v571_v17 = vld [vmem:[#allocation7 + $0xd8] sm:$0xff]  ;;  %v570_v18 = vld [vmem:[#allocation7 + $0xd0] sm:$0xff]  ;;  %v569_v19 = vld [vmem:[#allocation7 + $0xc8] sm:$0xff] }
  0x54   :  { %1358 = vmatprep.subr.mxu0 %v1802_v0  ;;  %1405 = vmatprep.mubr.msk.f32.mxu1 %vm1803_vm1, %v1802_v0  ;;  %v563_v27 = vld [vmem:[#allocation7 + $0x98] sm:$0xff]  ;;  %v562_v28 = vld [vmem:[#allocation7 + $0x90] sm:$0xff]  ;;  %v561_v30 = vld [vmem:[#allocation7 + $0x88] sm:$0xff] }
  0x55   :  { %1359 = vmatpush3.msra.mxu0 %v282_v20  ;;  %1375 = vmatprep.subr.mxu1 %v1802_v0  ;;  %v568_v20 = vld [vmem:[#allocation7 + $0xc0] sm:$0xff]  ;;  %v667_v44 = vld [vmem:[#allocation8 + $0xd8] sm:$0xff]  ;;  %v666_v46 = vld [vmem:[#allocation8 + $0xd0] sm:$0xff] }
  0x56   :  { %1360 = vmatprep.subr.mxu0 %v1802_v0  ;;  %1376 = vmatpush3.msra.mxu1 %v385_v31  ;;  %v560_v31 = vld [vmem:[#allocation7 + $0x80] sm:$0xff] }
  0x57   :  { %1361 = vmatpush3.msra.mxu0 %v281_v21  ;;  %1377 = vmatprep.subr.mxu1 %v1802_v0  ;;  %v567_v21 = vld [vmem:[#allocation7 + $0xb8] sm:$0xff] }
  0x58   :  { %1362 = vmatprep.subr.mxu0 %v1802_v0  ;;  %1378 = vmatpush3.msra.mxu1 %v384_v32 }
  0x59   :  { %1363 = vmatpush3.msra.mxu0 %v280_v22  ;;  %1379 = vmatprep.subr.mxu1 %v1802_v0  ;;  %v566_v22 = vld [vmem:[#allocation7 + $0xb0] sm:$0xff] }
  0x5a   :  { %1364 = vmatprep.subr.mxu0 %v1802_v0  ;;  %1380 = vmatpush3.msra.mxu1 %v383_v33  ;;  %v466_v33 = vld [vmem:[#allocation10 + $0x8] sm:$0xff] }
  0x5b   :  { %1365 = vmatpush3.msra.mxu0 %v279_v23  ;;  %1381 = vmatprep.subr.mxu1 %v1802_v0  ;;  %v120_v23 = vsub.s32 1, %v1928_v45 }
  0x5c   :  { %1366 = vmatprep.subr.mxu0 %v1802_v0  ;;  %1382 = vmatpush3.msra.mxu1 %v382_v34  ;;  %v465_v34 = vld [vmem:[#allocation10] sm:$0xff] }
  0x5d   :  { %1367 = vmatpush3.msra.mxu0 %v278_v24  ;;  %1383 = vmatprep.subr.mxu1 %v1802_v0  ;;  %v565_v24 = vld [vmem:[#allocation7 + $0xa8] sm:$0xff]  ;;  %v121_v26 = vrot.slane %v1934_v47, %v120_v23  ;;  %v762_v23 = vld [vmem:[#allocation10 + $0xd0] sm:$0xff] }
  0x5e   :  { %1368 = vmatprep.subr.mxu0 %v1802_v0  ;;  %1384 = vmatpush3.msra.mxu1 %v381_v35  ;;  %v1155_v35 = vld [vmem:[%s2109_s6] ss:$0 sm:$0xff] }
  0x5f   :  { %1369 = vmatpush3.msra.mxu0 %v277_v25  ;;  %1385 = vmatprep.subr.mxu1 %v1802_v0  ;;  %v564_v25 = vld [vmem:[#allocation7 + $0xa0] sm:$0xff] }
  0x60   :  { %1408 = vmatprep.subr.mxu0 %v1802_v0  ;;  %1386 = vmatpush3.msra.mxu1 %v380_v36 }
  0x61   :  { %1387 = vmatprep.subr.mxu1 %v1802_v0 }
  0x62   :  { %1388 = vmatpush3.msra.mxu1 %v379_v37 }
  0x63   :  { %1389 = vmatprep.subr.mxu1 %v1802_v0 }
  0x64   :  { %1390 = vmatpush3.msra.mxu1 %v378_v38 }
  0x65   :  { %1391 = vmatprep.subr.mxu1 %v1802_v0 }
  0x66   :  { %1392 = vmatpush3.msra.mxu1 %v377_v39 }
  0x67   :  { %1393 = vmatprep.subr.mxu1 %v1802_v0 }
  0x68   :  { %1394 = vmatpush3.msra.mxu1 %v376_v40  ;;  %v671_v40 = vld [vmem:[#allocation8 + $0xf8] sm:$0xff] }
  0x69   :  { %1395 = vmatprep.subr.mxu1 %v1802_v0 }
  0x6a   :  { %1396 = vmatpush3.msra.mxu1 %v375_v41  ;;  %v670_v41 = vld [vmem:[#allocation8 + $0xf0] sm:$0xff] }
  0x6b   :  { %1397 = vmatprep.subr.mxu1 %v1802_v0 }
  0x6c   :  { %1398 = vmatpush3.msra.mxu1 %v374_v42  ;;  %v669_v42 = vld [vmem:[#allocation8 + $0xe8] sm:$0xff] }
  0x6d   :  { %1399 = vmatprep.subr.mxu1 %v1802_v0 }
  0x6e   :  { %1400 = vmatpush3.msra.mxu1 %v373_v43  ;;  %v668_v43 = vld [vmem:[#allocation8 + $0xe0] sm:$0xff] }
  0x6f   :  { %1401 = vmatprep.subr.mxu1 %v1802_v0 }
  0x70   :  { %1402 = vmatpush3.msra.mxu1 %v372_v52  ;;  %v661_v52 = vld [vmem:[#allocation8 + $0xa8] sm:$0xff] }
  0x71   :  { %1403 = vmatprep.subr.mxu1 %v1802_v0 }
  0x72   :  { %1404 = vmatpush3.msra.mxu1 %v371_v53  ;;  %v660_v53 = vld [vmem:[#allocation8 + $0xa0] sm:$0xff] }
  0x73   :  { %1443 = vmatprep.subr.mxu1 %v1802_v0 }
 0x107   :  { %v199_v49 = vpop.f32.mrf.mxu1 }
 0x108   :  { %v200_v50 = vadd.f32 %v199_v49, %v117_v48  ;;  %v665_v48 = vld [vmem:[#allocation8 + $0xc8] sm:$0xff]  ;;  %v664_v49 = vld [vmem:[#allocation8 + $0xc0] sm:$0xff] }
 0x109   :  { %v1941_v54 = vpop.f32.mrf.mxu1 }
 0x10a   :  { %v274_v51 = vmax.f32 %v200_v50, 0.0  ;;  %v202_v29 = vadd.f32 %v1941_v54, %v121_v26  ;;  %v663_v50 = vld [vmem:[#allocation8 + $0xb8] sm:$0xff] }
 0x10b   :  { %v659_v54 = vld [vmem:[#allocation8 + $0x98] sm:$0xff] }
 0x10c   :  { %1371 = vmatmul.mubr.f32.vlgmr.msra.gmra.mxu0 %v274_v51  ;;  %v275_v32 = vmax.f32 %v202_v29, 0.0  ;;  %v662_v51 = vld [vmem:[#allocation8 + $0xb0] sm:$0xff]  ;;  %v759_v26 = vld [vmem:[#allocation10 + $0xb8] sm:$0xff]  ;;  %v756_v29 = vld [vmem:[#allocation10 + $0xa0] sm:$0xff] }
 0x10d   :  { %1440 = vmatprep.mubr.msk.f32.mxu0 %vm1803_vm1, %v1802_v0  ;;  %1409 = vmatpush3.msra.mxu0 %v480_v56  ;;  %v658_v56 = vld [vmem:[#allocation8 + $0x90] sm:$0xff] }
 0x10e   :  { %1410 = vmatprep.subr.mxu0 %v1802_v0 }
 0x10f   :  { %1411 = vmatpush3.msra.mxu0 %v479_v57  ;;  %v1158_v57 = vld [vmem:[%s2107_s4 + $0x1] ss:$0 sm:$0xff] }
 0x110   :  { %1412 = vmatprep.subr.mxu0 %v1802_v0 }
 0x111   :  { %v1943_v55 = vpop.f32.mrf.mxu1  ;;  %1413 = vmatpush3.msra.mxu0 %v478_v59 }
 0x112   :  { %1414 = vmatprep.subr.mxu0 %v1802_v0 }
 0x113   :  { %v1337_v58 = vpop.f32.mrf.mxu1  ;;  %1415 = vmatpush3.msra.mxu0 %v477_v60 }
 0x114   :  { %1416 = vmatprep.subr.mxu0 %v1802_v0  ;;  %v657_v58 = vld [vmem:[#allocation8 + $0x88] sm:$0xff] }
 0x115   :  { %1417 = vmatpush3.msra.mxu0 %v476_v61  ;;  %v656_v61 = vld [vmem:[#allocation8 + $0x80] sm:$0xff] }
 0x116   :  { %1418 = vmatprep.subr.mxu0 %v1802_v0 }
 0x117   :  { %1419 = vmatpush3.msra.mxu0 %v475_v62 }
 0x118   :  { %1420 = vmatprep.subr.mxu0 %v1802_v0 }
 0x119   :  { %1421 = vmatpush3.msra.mxu0 %v474_v63 }
 0x11a   :  { %1422 = vmatprep.subr.mxu0 %v1802_v0 }
 0x11b   :  { %1423 = vmatpush3.msra.mxu0 %v473_v1  ;;  %v863_v1 = vld [vmem:[#allocation7 + $0x178] sm:$0xff] }
 0x11c   :  { %1424 = vmatprep.subr.mxu0 %v1802_v0 }
 0x11d   :  { %1425 = vmatpush3.msra.mxu0 %v472_v2  ;;  %v862_v2 = vld [vmem:[#allocation7 + $0x170] sm:$0xff] }
 0x11e   :  { %1426 = vmatprep.subr.mxu0 %v1802_v0 }
 0x11f   :  { %1427 = vmatpush3.msra.mxu0 %v471_v3  ;;  %v861_v3 = vld [vmem:[#allocation7 + $0x168] sm:$0xff] }
 0x120   :  { %1428 = vmatprep.subr.mxu0 %v1802_v0 }
 0x121   :  { %1429 = vmatpush3.msra.mxu0 %v470_v4  ;;  %v860_v4 = vld [vmem:[#allocation7 + $0x160] sm:$0xff] }
 0x122   :  { %1430 = vmatprep.subr.mxu0 %v1802_v0 }
 0x123   :  { %1431 = vmatpush3.msra.mxu0 %v469_v5  ;;  %v859_v5 = vld [vmem:[#allocation7 + $0x158] sm:$0xff] }
 0x124   :  { %1432 = vmatprep.subr.mxu0 %v1802_v0 }
 0x125   :  { %1433 = vmatpush3.msra.mxu0 %v468_v6  ;;  %v858_v6 = vld [vmem:[#allocation7 + $0x150] sm:$0xff] }
 0x126   :  { %1434 = vmatprep.subr.mxu0 %v1802_v0 }
 0x127   :  { %1435 = vmatpush3.msra.mxu0 %v467_v7  ;;  %v857_v7 = vld [vmem:[#allocation7 + $0x148] sm:$0xff] }
 0x128   :  { %1436 = vmatprep.subr.mxu0 %v1802_v0 }
 0x129   :  { %1437 = vmatpush3.msra.mxu0 %v466_v33  ;;  %v752_v33 = vld [vmem:[#allocation10 + $0x80] sm:$0xff] }
 0x12a   :  { %1438 = vmatprep.subr.mxu0 %v1802_v0 }
 0x12b   :  { %1439 = vmatpush3.msra.mxu0 %v465_v34  ;;  %v1156_v34 = vld [vmem:[%s2111_s8] ss:$0 sm:$0xff] }
 0x12c   :  { %1478 = vmatprep.subr.mxu0 %v1802_v0 }
 0x1cc   :  { %v366_v9 = vpop.f32.mrf.mxu0 }
 0x1cd   :  { %v367_v10 = vadd.f32 %v1154_v8, %v366_v9  ;;  %v856_v8 = vld [vmem:[#allocation7 + $0x140] sm:$0xff]  ;;  %v855_v9 = vld [vmem:[#allocation7 + $0x138] sm:$0xff] }
 0x1ce   :  { %v1372_v11 = vpop.f32.mrf.mxu0 }
 0x1cf   :  { %v370_v12 = vmax.f32 %v367_v10, 0.0  ;;  %v854_v10 = vld [vmem:[#allocation7 + $0x130] sm:$0xff]  ;;  %v124_v11 = vsub.s32 2, %v1928_v45 }
 0x1d1   :  { %1406 = vmatmul.mubr.f32.vlgmr.msra.gmra.mxu1 %v370_v12  ;;  %v853_v12 = vld [vmem:[#allocation7 + $0x128] sm:$0xff] }
 0x1d2   :  { %1444 = vmatpush3.msra.mxu1 %v575_v13  ;;  %1475 = vmatprep.mubr.msk.f32.mxu1 %vm1803_vm1, %v1802_v0  ;;  %v852_v13 = vld [vmem:[#allocation7 + $0x120] sm:$0xff] }
 0x1d3   :  { %1445 = vmatprep.subr.mxu1 %v1802_v0 }
 0x1d4   :  { %1446 = vmatpush3.msra.mxu1 %v574_v14  ;;  %v125_v14 = vrot.slane %v1934_v47, %v124_v11  ;;  %v767_v47 = vld [vmem:[#allocation10 + $0xf8] sm:$0xff]  ;;  %v1048_v11 = vld [vmem:[#allocation10 + $0x140] sm:$0xff] }
 0x1d5   :  { %1447 = vmatprep.subr.mxu1 %v1802_v0 }
 0x1d6   :  { %1448 = vmatpush3.msra.mxu1 %v573_v15  ;;  %v851_v15 = vld [vmem:[#allocation7 + $0x118] sm:$0xff]  ;;  %v271_v45 = vadd.f32 %v1943_v55, %v125_v14  ;;  %v766_v55 = vld [vmem:[#allocation10 + $0xf0] sm:$0xff]  ;;  %v1045_v14 = vld [vmem:[#allocation10 + $0x128] sm:$0xff] }
 0x1d7   :  { %1449 = vmatprep.subr.mxu1 %v1802_v0 }
 0x1d8   :  { %1450 = vmatpush3.msra.mxu1 %v572_v16  ;;  %v850_v16 = vld [vmem:[#allocation7 + $0x110] sm:$0xff] }
 0x1d9   :  { %1451 = vmatprep.subr.mxu1 %v1802_v0 }
 0x1da   :  { %1452 = vmatpush3.msra.mxu1 %v571_v17  ;;  %v849_v17 = vld [vmem:[#allocation7 + $0x108] sm:$0xff] }
 0x1db   :  { %1453 = vmatprep.subr.mxu1 %v1802_v0 }
 0x1dc   :  { %1454 = vmatpush3.msra.mxu1 %v570_v18  ;;  %v848_v18 = vld [vmem:[#allocation7 + $0x100] sm:$0xff] }
 0x1dd   :  { %1455 = vmatprep.subr.mxu1 %v1802_v0 }
 0x1de   :  { %1456 = vmatpush3.msra.mxu1 %v569_v19  ;;  %v276_v19 = vmax.f32 %v271_v45, 0.0  ;;  %v1042_v45 = vld [vmem:[#allocation10 + $0x110] sm:$0xff] }
 0x1df   :  { %1457 = vmatprep.subr.mxu1 %v1802_v0 }
 0x1e0   :  { %1458 = vmatpush3.msra.mxu1 %v568_v20  ;;  %v765_v20 = vld [vmem:[#allocation10 + $0xe8] sm:$0xff] }
 0x1e1   :  { %1459 = vmatprep.subr.mxu1 %v1802_v0 }
 0x1e2   :  { %1460 = vmatpush3.msra.mxu1 %v567_v21  ;;  %v764_v21 = vld [vmem:[#allocation10 + $0xe0] sm:$0xff] }
 0x1e3   :  { %1461 = vmatprep.subr.mxu1 %v1802_v0 }
 0x1e4   :  { %1462 = vmatpush3.msra.mxu1 %v566_v22  ;;  %v763_v22 = vld [vmem:[#allocation10 + $0xd8] sm:$0xff] }
 0x1e5   :  { %1463 = vmatprep.subr.mxu1 %v1802_v0 }
 0x1e6   :  { %1464 = vmatpush3.msra.mxu1 %v565_v24  ;;  %v761_v24 = vld [vmem:[#allocation10 + $0xc8] sm:$0xff] }
 0x1e7   :  { %1465 = vmatprep.subr.mxu1 %v1802_v0 }
 0x1e8   :  { %1466 = vmatpush3.msra.mxu1 %v564_v25  ;;  %v760_v25 = vld [vmem:[#allocation10 + $0xc0] sm:$0xff] }
 0x1e9   :  { %1467 = vmatprep.subr.mxu1 %v1802_v0 }
 0x1ea   :  { %1468 = vmatpush3.msra.mxu1 %v563_v27  ;;  %v758_v27 = vld [vmem:[#allocation10 + $0xb0] sm:$0xff] }
 0x1eb   :  { %1469 = vmatprep.subr.mxu1 %v1802_v0 }
 0x1ec   :  { %1470 = vmatpush3.msra.mxu1 %v562_v28  ;;  %v757_v28 = vld [vmem:[#allocation10 + $0xa8] sm:$0xff] }
 0x1ed   :  { %1471 = vmatprep.subr.mxu1 %v1802_v0 }
 0x1ee   :  { %1472 = vmatpush3.msra.mxu1 %v561_v30  ;;  %v755_v30 = vld [vmem:[#allocation10 + $0x98] sm:$0xff] }
 0x1ef   :  { %1473 = vmatprep.subr.mxu1 %v1802_v0 }
 0x1f0   :  { %1474 = vmatpush3.msra.mxu1 %v560_v31  ;;  %v754_v31 = vld [vmem:[#allocation10 + $0x90] sm:$0xff] }
 0x1f1   :  { %1476 = vmatmul.mubr.f32.vlgmr.msra.gmra.mxu1 %v275_v32  ;;  %1513 = vmatprep.subr.mxu1 %v1802_v0  ;;  %v753_v32 = vld [vmem:[#allocation10 + $0x88] sm:$0xff] }
 0x1f2   :  { %1545 = vmatprep.mubr.msk.f32.mxu1 %vm1803_vm1, %v1802_v0  ;;  %1514 = vmatpush3.msra.mxu1 %v767_v47 }
 0x1f3   :  { %1515 = vmatprep.subr.mxu1 %v1802_v0 }
 0x1f4   :  { %1516 = vmatpush3.msra.mxu1 %v766_v55 }
 0x1f5   :  { %1517 = vmatprep.subr.mxu1 %v1802_v0 }
 0x1f6   :  { %1518 = vmatpush3.msra.mxu1 %v765_v20 }
 0x1f7   :  { %1519 = vmatprep.subr.mxu1 %v1802_v0 }
 0x1f8   :  { %1520 = vmatpush3.msra.mxu1 %v764_v21  ;;  %v1166_v21 = vld [vmem:[%s2109_s6 + $0x2] ss:$0 sm:$0xff] }
 0x1f9   :  { %1521 = vmatprep.subr.mxu1 %v1802_v0 }
 0x1fa   :  { %1522 = vmatpush3.msra.mxu1 %v763_v22 }
 0x1fb   :  { %1523 = vmatprep.subr.mxu1 %v1802_v0 }
 0x1fc   :  { %1524 = vmatpush3.msra.mxu1 %v762_v23 }
 0x1fd   :  { %1525 = vmatprep.subr.mxu1 %v1802_v0 }
 0x1fe   :  { %1526 = vmatpush3.msra.mxu1 %v761_v24 }
 0x1ff   :  { %1527 = vmatprep.subr.mxu1 %v1802_v0 }
 0x200   :  { %1528 = vmatpush3.msra.mxu1 %v760_v25 }
 0x201   :  { %1529 = vmatprep.subr.mxu1 %v1802_v0 }
 0x202   :  { %1530 = vmatpush3.msra.mxu1 %v759_v26 }
 0x203   :  { %1531 = vmatprep.subr.mxu1 %v1802_v0 }
 0x204   :  { %1532 = vmatpush3.msra.mxu1 %v758_v27 }
 0x205   :  { %1533 = vmatprep.subr.mxu1 %v1802_v0 }
 0x206   :  { %1534 = vmatpush3.msra.mxu1 %v757_v28 }
 0x207   :  { %1535 = vmatprep.subr.mxu1 %v1802_v0 }
 0x208   :  { %1536 = vmatpush3.msra.mxu1 %v756_v29 }
 0x209   :  { %1537 = vmatprep.subr.mxu1 %v1802_v0 }
 0x20a   :  { %1538 = vmatpush3.msra.mxu1 %v755_v30 }
 0x20b   :  { %1539 = vmatprep.subr.mxu1 %v1802_v0 }
 0x20c   :  { %1540 = vmatpush3.msra.mxu1 %v754_v31 }
 0x20d   :  { %1541 = vmatprep.subr.mxu1 %v1802_v0 }
 0x20e   :  { %1542 = vmatpush3.msra.mxu1 %v753_v32 }
 0x20f   :  { %1543 = vmatprep.subr.mxu1 %v1802_v0 }
 0x210   :  { %1544 = vmatpush3.msra.mxu1 %v752_v33 }
 0x211   :  { %1583 = vmatprep.subr.mxu1 %v1802_v0 }
 0x291   :  { %v460_v36 = vpop.f32.mrf.mxu1 }
 0x292   :  { %v461_v37 = vadd.f32 %v1155_v35, %v460_v36 }
 0x293   :  { %v1407_v38 = vpop.f32.mrf.mxu1 }
 0x294   :  { %v464_v39 = vmax.f32 %v461_v37, 0.0  ;;  %v1160_v38 = vld [vmem:[%s2109_s6 + $0x1] ss:$0 sm:$0xff] }
 0x296   :  { %1441 = vmatmul.mubr.f32.vlgmr.msra.gmra.mxu0 %v464_v39 }
 0x297   :  { %1479 = vmatpush3.msra.mxu0 %v671_v40  ;;  %1510 = vmatprep.mubr.msk.f32.mxu0 %vm1803_vm1, %v1802_v0 }
 0x298   :  { %1480 = vmatprep.subr.mxu0 %v1802_v0 }
 0x299   :  { %1481 = vmatpush3.msra.mxu0 %v670_v41 }
 0x29a   :  { %1482 = vmatprep.subr.mxu0 %v1802_v0 }
 0x29b   :  { %1483 = vmatpush3.msra.mxu0 %v669_v42 }
 0x29c   :  { %1484 = vmatprep.subr.mxu0 %v1802_v0 }
 0x29d   :  { %1485 = vmatpush3.msra.mxu0 %v668_v43  ;;  %v959_v43 = vld [vmem:[#allocation8 + $0x178] sm:$0xff] }
 0x29e   :  { %1486 = vmatprep.subr.mxu0 %v1802_v0 }
 0x29f   :  { %1487 = vmatpush3.msra.mxu0 %v667_v44  ;;  %v958_v44 = vld [vmem:[#allocation8 + $0x170] sm:$0xff] }
 0x2a0   :  { %1488 = vmatprep.subr.mxu0 %v1802_v0 }
 0x2a1   :  { %1489 = vmatpush3.msra.mxu0 %v666_v46  ;;  %v957_v46 = vld [vmem:[#allocation8 + $0x168] sm:$0xff] }
 0x2a2   :  { %1490 = vmatprep.subr.mxu0 %v1802_v0 }
 0x2a3   :  { %1491 = vmatpush3.msra.mxu0 %v665_v48  ;;  %v956_v48 = vld [vmem:[#allocation8 + $0x160] sm:$0xff] }
 0x2a4   :  { %1492 = vmatprep.subr.mxu0 %v1802_v0 }
 0x2a5   :  { %1493 = vmatpush3.msra.mxu0 %v664_v49  ;;  %v955_v49 = vld [vmem:[#allocation8 + $0x158] sm:$0xff] }
 0x2a6   :  { %1494 = vmatprep.subr.mxu0 %v1802_v0 }
 0x2a7   :  { %1495 = vmatpush3.msra.mxu0 %v663_v50  ;;  %v954_v50 = vld [vmem:[#allocation8 + $0x150] sm:$0xff] }
 0x2a8   :  { %1496 = vmatprep.subr.mxu0 %v1802_v0 }
 0x2a9   :  { %1497 = vmatpush3.msra.mxu0 %v662_v51  ;;  %v953_v51 = vld [vmem:[#allocation8 + $0x148] sm:$0xff] }
 0x2aa   :  { %1498 = vmatprep.subr.mxu0 %v1802_v0 }
 0x2ab   :  { %1499 = vmatpush3.msra.mxu0 %v661_v52  ;;  %v952_v52 = vld [vmem:[#allocation8 + $0x140] sm:$0xff] }
 0x2ac   :  { %1500 = vmatprep.subr.mxu0 %v1802_v0 }
 0x2ad   :  { %1501 = vmatpush3.msra.mxu0 %v660_v53  ;;  %v951_v53 = vld [vmem:[#allocation8 + $0x138] sm:$0xff] }
 0x2ae   :  { %1502 = vmatprep.subr.mxu0 %v1802_v0 }
 0x2af   :  { %1503 = vmatpush3.msra.mxu0 %v659_v54  ;;  %v950_v54 = vld [vmem:[#allocation8 + $0x130] sm:$0xff] }
 0x2b0   :  { %1504 = vmatprep.subr.mxu0 %v1802_v0 }
 0x2b1   :  { %v650_v59 = vpop.f32.mrf.mxu1  ;;  %1505 = vmatpush3.msra.mxu0 %v658_v56  ;;  %v949_v56 = vld [vmem:[#allocation8 + $0x128] sm:$0xff] }
 0x2b2   :  { %v651_v60 = vadd.f32 %v1158_v57, %v650_v59  ;;  %1506 = vmatprep.subr.mxu0 %v1802_v0  ;;  %v948_v57 = vld [vmem:[#allocation8 + $0x120] sm:$0xff]  ;;  %v946_v59 = vld [vmem:[#allocation8 + $0x110] sm:$0xff] }
 0x2b3   :  { %v1477_v62 = vpop.f32.mrf.mxu1  ;;  %1507 = vmatpush3.msra.mxu0 %v657_v58  ;;  %v947_v58 = vld [vmem:[#allocation8 + $0x118] sm:$0xff] }
 0x2b4   :  { %v654_v63 = vmax.f32 %v651_v60, 0.0  ;;  %1508 = vmatprep.subr.mxu0 %v1802_v0  ;;  %v1164_v60 = vld [vmem:[%s2107_s4 + $0x2] ss:$0 sm:$0xff] }
 0x2b5   :  { %1509 = vmatpush3.msra.mxu0 %v656_v61  ;;  %v945_v61 = vld [vmem:[#allocation8 + $0x108] sm:$0xff] }
 0x2b6   :  { %1511 = vmatmul.mubr.f32.vlgmr.msra.gmra.mxu0 %v654_v63  ;;  %1548 = vmatprep.subr.mxu0 %v1802_v0 }
 0x2b7   :  { %1549 = vmatpush3.msra.mxu0 %v863_v1  ;;  %1580 = vmatprep.mubr.msk.f32.mxu0 %vm1803_vm1, %v1802_v0  ;;  %v944_v1 = vld [vmem:[#allocation8 + $0x100] sm:$0xff] }
 0x2b8   :  { %1550 = vmatprep.subr.mxu0 %v1802_v0 }
 0x2b9   :  { %1551 = vmatpush3.msra.mxu0 %v862_v2 }
 0x2ba   :  { %1552 = vmatprep.subr.mxu0 %v1802_v0 }
 0x2bb   :  { %1553 = vmatpush3.msra.mxu0 %v861_v3 }
 0x2bc   :  { %1554 = vmatprep.subr.mxu0 %v1802_v0 }
 0x2bd   :  { %1555 = vmatpush3.msra.mxu0 %v860_v4  ;;  %v1055_v4 = vld [vmem:[#allocation10 + $0x178] sm:$0xff] }
 0x2be   :  { %1556 = vmatprep.subr.mxu0 %v1802_v0 }
 0x2bf   :  { %1557 = vmatpush3.msra.mxu0 %v859_v5  ;;  %v1054_v5 = vld [vmem:[#allocation10 + $0x170] sm:$0xff] }
 0x2c0   :  { %1558 = vmatprep.subr.mxu0 %v1802_v0 }
 0x2c1   :  { %1559 = vmatpush3.msra.mxu0 %v858_v6  ;;  %v1053_v6 = vld [vmem:[#allocation10 + $0x168] sm:$0xff] }
 0x2c2   :  { %1560 = vmatprep.subr.mxu0 %v1802_v0 }
 0x2c3   :  { %1561 = vmatpush3.msra.mxu0 %v857_v7  ;;  %v1052_v7 = vld [vmem:[#allocation10 + $0x160] sm:$0xff] }
 0x2c4   :  { %1562 = vmatprep.subr.mxu0 %v1802_v0 }
 0x2c5   :  { %1563 = vmatpush3.msra.mxu0 %v856_v8  ;;  %v1051_v8 = vld [vmem:[#allocation10 + $0x158] sm:$0xff] }
 0x2c6   :  { %1564 = vmatprep.subr.mxu0 %v1802_v0 }
 0x2c7   :  { %1565 = vmatpush3.msra.mxu0 %v855_v9  ;;  %v1050_v9 = vld [vmem:[#allocation10 + $0x150] sm:$0xff] }
 0x2c8   :  { %1566 = vmatprep.subr.mxu0 %v1802_v0 }
 0x2c9   :  { %1567 = vmatpush3.msra.mxu0 %v854_v10  ;;  %v1049_v10 = vld [vmem:[#allocation10 + $0x148] sm:$0xff] }
 0x2ca   :  { %1568 = vmatprep.subr.mxu0 %v1802_v0 }
 0x2cb   :  { %1569 = vmatpush3.msra.mxu0 %v853_v12  ;;  %v1047_v12 = vld [vmem:[#allocation10 + $0x138] sm:$0xff] }
 0x2cc   :  { %1570 = vmatprep.subr.mxu0 %v1802_v0 }
 0x2cd   :  { %1571 = vmatpush3.msra.mxu0 %v852_v13  ;;  %v1046_v13 = vld [vmem:[#allocation10 + $0x130] sm:$0xff] }
 0x2ce   :  { %1572 = vmatprep.subr.mxu0 %v1802_v0 }
 0x2cf   :  { %1573 = vmatpush3.msra.mxu0 %v851_v15  ;;  %v1044_v15 = vld [vmem:[#allocation10 + $0x120] sm:$0xff] }
 0x2d0   :  { %1574 = vmatprep.subr.mxu0 %v1802_v0 }
 0x2d1   :  { %1575 = vmatpush3.msra.mxu0 %v850_v16  ;;  %v1043_v16 = vld [vmem:[#allocation10 + $0x118] sm:$0xff] }
 0x2d2   :  { %1576 = vmatprep.subr.mxu0 %v1802_v0 }
 0x2d3   :  { %1577 = vmatpush3.msra.mxu0 %v849_v17  ;;  %v1041_v17 = vld [vmem:[#allocation10 + $0x108] sm:$0xff] }
 0x2d4   :  { %1578 = vmatprep.subr.mxu0 %v1802_v0 }
 0x2d5   :  { %1579 = vmatpush3.msra.mxu0 %v848_v18  ;;  %v1040_v18 = vld [vmem:[#allocation10 + $0x100] sm:$0xff] }
 0x2d6   :  { %1581 = vmatmul.mubr.f32.vlgmr.msra.gmra.mxu0 %v276_v19  ;;  %1618 = vmatprep.subr.mxu0 %v1802_v0  ;;  %v1162_v19 = vld [vmem:[%s2111_s8 + $0x1] ss:$0 sm:$0xff] }
 0x2d7   :  { %1650 = vmatprep.mubr.msk.f32.mxu0 %vm1803_vm1, %v1802_v0  ;;  %1619 = vmatpush3.msra.mxu0 %v1055_v4 }
 0x2d8   :  { %1620 = vmatprep.subr.mxu0 %v1802_v0 }
 0x2d9   :  { %1621 = vmatpush3.msra.mxu0 %v1054_v5 }
 0x2da   :  { %1622 = vmatprep.subr.mxu0 %v1802_v0 }
 0x2db   :  { %1623 = vmatpush3.msra.mxu0 %v1053_v6 }
 0x2dc   :  { %1624 = vmatprep.subr.mxu0 %v1802_v0 }
 0x2dd   :  { %1625 = vmatpush3.msra.mxu0 %v1052_v7 }
 0x2de   :  { %1626 = vmatprep.subr.mxu0 %v1802_v0 }
 0x2df   :  { %1627 = vmatpush3.msra.mxu0 %v1051_v8 }
 0x2e0   :  { %1628 = vmatprep.subr.mxu0 %v1802_v0 }
 0x2e1   :  { %1629 = vmatpush3.msra.mxu0 %v1050_v9 }
 0x2e2   :  { %1630 = vmatprep.subr.mxu0 %v1802_v0 }
 0x2e3   :  { %1631 = vmatpush3.msra.mxu0 %v1049_v10 }
 0x2e4   :  { %1632 = vmatprep.subr.mxu0 %v1802_v0 }
 0x2e5   :  { %1633 = vmatpush3.msra.mxu0 %v1048_v11 }
 0x2e6   :  { %1634 = vmatprep.subr.mxu0 %v1802_v0 }
 0x2e7   :  { %1635 = vmatpush3.msra.mxu0 %v1047_v12 }
 0x2e8   :  { %1636 = vmatprep.subr.mxu0 %v1802_v0 }
 0x2e9   :  { %1637 = vmatpush3.msra.mxu0 %v1046_v13 }
 0x2ea   :  { %1638 = vmatprep.subr.mxu0 %v1802_v0 }
 0x2eb   :  { %1639 = vmatpush3.msra.mxu0 %v1045_v14 }
 0x2ec   :  { %1640 = vmatprep.subr.mxu0 %v1802_v0 }
 0x2ed   :  { %1641 = vmatpush3.msra.mxu0 %v1044_v15 }
 0x2ee   :  { %1642 = vmatprep.subr.mxu0 %v1802_v0 }
 0x2ef   :  { %1643 = vmatpush3.msra.mxu0 %v1043_v16 }
 0x2f0   :  { %1644 = vmatprep.subr.mxu0 %v1802_v0 }
 0x2f1   :  { %1645 = vmatpush3.msra.mxu0 %v1042_v45 }
 0x2f2   :  { %1646 = vmatprep.subr.mxu0 %v1802_v0 }
 0x2f3   :  { %1647 = vmatpush3.msra.mxu0 %v1041_v17 }
 0x2f4   :  { %1648 = vmatprep.subr.mxu0 %v1802_v0 }
 0x2f5   :  { %1649 = vmatpush3.msra.mxu0 %v1040_v18 }
 0x356   :  { %v554_v35 = vpop.f32.mrf.mxu0 }
 0x357   :  { %v555_v36 = vadd.f32 %v1156_v34, %v554_v35 }
 0x358   :  { %v1442_v37 = vpop.f32.mrf.mxu0 }
 0x359   :  { %558 = vst [vmem:[#allocation11] sm:$0x3] %v555_v36 }
 0x376   :  { %v746_v39 = vpop.f32.mrf.mxu0 }
 0x377   :  { %v747_v40 = vadd.f32 %v1160_v38, %v746_v39 }
 0x378   :  { %v1512_v41 = vpop.f32.mrf.mxu0 }
 0x379   :  { %v750_v42 = vmax.f32 %v747_v40, 0.0 }
 0x37b   :  { %1546 = vmatmul.mubr.f32.vlgmr.msra.gmra.mxu1 %v750_v42 }
 0x37c   :  { %1584 = vmatpush3.msra.mxu1 %v959_v43  ;;  %1615 = vmatprep.mubr.msk.f32.mxu1 %vm1803_vm1, %v1802_v0 }
 0x37d   :  { %1585 = vmatprep.subr.mxu1 %v1802_v0 }
 0x37e   :  { %1586 = vmatpush3.msra.mxu1 %v958_v44 }
 0x37f   :  { %1587 = vmatprep.subr.mxu1 %v1802_v0 }
 0x380   :  { %1588 = vmatpush3.msra.mxu1 %v957_v46 }
 0x381   :  { %1589 = vmatprep.subr.mxu1 %v1802_v0 }
 0x382   :  { %1590 = vmatpush3.msra.mxu1 %v956_v48 }
 0x383   :  { %1591 = vmatprep.subr.mxu1 %v1802_v0 }
 0x384   :  { %1592 = vmatpush3.msra.mxu1 %v955_v49 }
 0x385   :  { %1593 = vmatprep.subr.mxu1 %v1802_v0 }
 0x386   :  { %1594 = vmatpush3.msra.mxu1 %v954_v50 }
 0x387   :  { %1595 = vmatprep.subr.mxu1 %v1802_v0 }
 0x388   :  { %1596 = vmatpush3.msra.mxu1 %v953_v51 }
 0x389   :  { %1597 = vmatprep.subr.mxu1 %v1802_v0 }
 0x38a   :  { %1598 = vmatpush3.msra.mxu1 %v952_v52 }
 0x38b   :  { %1599 = vmatprep.subr.mxu1 %v1802_v0 }
 0x38c   :  { %1600 = vmatpush3.msra.mxu1 %v951_v53 }
 0x38d   :  { %1601 = vmatprep.subr.mxu1 %v1802_v0 }
 0x38e   :  { %1602 = vmatpush3.msra.mxu1 %v950_v54 }
 0x38f   :  { %1603 = vmatprep.subr.mxu1 %v1802_v0 }
 0x390   :  { %1604 = vmatpush3.msra.mxu1 %v949_v56 }
 0x391   :  { %1605 = vmatprep.subr.mxu1 %v1802_v0 }
 0x392   :  { %1606 = vmatpush3.msra.mxu1 %v948_v57 }
 0x393   :  { %1607 = vmatprep.subr.mxu1 %v1802_v0 }
 0x394   :  { %1608 = vmatpush3.msra.mxu1 %v947_v58 }
 0x395   :  { %1609 = vmatprep.subr.mxu1 %v1802_v0 }
 0x396   :  { %v938_v62 = vpop.f32.mrf.mxu0  ;;  %1610 = vmatpush3.msra.mxu1 %v946_v59 }
 0x397   :  { %v939_v63 = vadd.f32 %v1164_v60, %v938_v62  ;;  %1611 = vmatprep.subr.mxu1 %v1802_v0 }
 0x398   :  { %v1582_v2 = vpop.f32.mrf.mxu0  ;;  %1612 = vmatpush3.msra.mxu1 %v945_v61 }
 0x399   :  { %v942_v3 = vmax.f32 %v939_v63, 0.0  ;;  %1613 = vmatprep.subr.mxu1 %v1802_v0  ;;  %v1168_v0 = vld [vmem:[%s2111_s8 + $0x2] ss:$0 sm:$0xff] }
 0x39a   :  { %1614 = vmatpush3.msra.mxu1 %v944_v1 }
 0x39b   :  { %1616 = vmatmul.mubr.f32.vlgmr.msra.gmra.mxu1 %v942_v3 }
 0x43b   :  { %v842_v47 = vpop.f32.mrf.mxu1 }
 0x43c   :  { %v843_v55 = vadd.f32 %v1162_v19, %v842_v47 }
 0x43d   :  { %v1547_v20 = vpop.f32.mrf.mxu1 }
 0x43e   :  { %846 = vst [vmem:[#allocation11 + $0x2] sm:$0x3] %v843_v55 }
 0x45b   :  { %v1034_v22 = vpop.f32.mrf.mxu1 }
 0x45c   :  { %v1035_v23 = vadd.f32 %v1166_v21, %v1034_v22 }
 0x45d   :  { %v1617_v24 = vpop.f32.mrf.mxu1 }
 0x45e   :  { %v1038_v25 = vmax.f32 %v1035_v23, 0.0 }
 0x460   :  { %1651 = vmatmul.mubr.f32.vlgmr.msra.gmra.mxu0 %v1038_v25 }
 0x520   :  { %v1130_v26 = vpop.f32.mrf.mxu0 }
 0x521   :  { %v1131_v27 = vadd.f32 %v1168_v0, %v1130_v26 }
 0x522   :  { %v1652_v28 = vpop.f32.mrf.mxu0 }
 0x523   :  { %1134 = vst [vmem:[#allocation11 + $0x4] sm:$0x3] %v1131_v27 }
 0x524   :  { %1776 = shalt.err (!%p1773_p1)
}
 0x525   :  { %1144 = dma.vmem_to_hbm [thread:$0]  %s1142_s30, 96, %s2112_s9, [#allocation4]  }
 0x526   :  { %1791 = dma.done.wait [#allocation4], 96  }
 0x527   :  { %1792 = vsyncadd [#allocation4], 4294967200 }
 0x528   :  { %1148 = vsyncpa [#allocation3], 1 }
 0x529   :  { %1149 = vsyncpa [#allocation6], 1 }
 0x52a   :  { %1150 = vsyncpa [#allocation9], 1 }
 0x52b   :  { %1151 = vsyncpa [#allocation4], 1 }

</bundles_post_ra>
